<compile_context>
chip_gen: v5e
topology: v5e:2x2
jax: 0.10.0
libtpu: 0.0.40
codegen_flags: <defaults>
</compile_context>

<pallas_src>
import jax
import jax.numpy as jnp
from jax import lax
from jax.experimental import pallas as pl
from jax.experimental.pallas import tpu as pltpu

_EPS = 1e-5  # nn.InstanceNorm2d default eps


def _adain_kernel(x_ref, mean_ref, std_ref, o_ref):
    # x_ref block: (rows, H*W) -- each row is one (n, c) channel plane.
    # mean_ref / std_ref: (1, H*W) style rows (already broadcast to (H, W) and
    # flattened in the wrapper), small and VMEM-resident every step.
    x = x_ref[...].astype(jnp.float32)
    inv_hw = 1.0 / x.shape[-1]
    s1 = jnp.sum(x, axis=-1, keepdims=True)              # (rows, 1)
    s2 = jnp.sum(x * x, axis=-1, keepdims=True)          # (rows, 1)
    mu = s1 * inv_hw
    var = s2 * inv_hw - mu * mu                          # biased var (torch IN)
    normed = (x - mu) * lax.rsqrt(var + _EPS)
    o_ref[...] = (normed * std_ref[...] + mean_ref[...]).astype(o_ref.dtype)


def _pick_row_block(nc, hw, max_block_bytes=4 << 20):
    # BlockSpec double-buffers input and output (~4x a block in flight), so a
    # 4 MiB block keeps us far inside v7x's 64 MiB VMEM (and v5e/v6e's 128 MiB).
    rows = max(8, max_block_bytes // (hw * 4))
    if rows >= nc:
        return nc                                        # full array -> 1 step
    return rows - rows % 8                               # keep sublane-aligned


def adain_forward(x, latent_style, weight, bias):
    N, C, H, W = x.shape
    L = latent_style.shape[1]
    NC, HW = N * C, H * W

    # style_transform: tiny (N, L) @ (L, 2L) matmul -- leave it to XLA rather
    # than paying a pallas_call launch + an HBM round-trip of `style`.
    style = latent_style.astype(jnp.float32) @ weight.T.astype(jnp.float32) + bias
    lat_mean2d = style[:, :L]                            # chunk(2, dim=1)[0]
    lat_std2d = style[:, L:]                             # chunk(2, dim=1)[1]
    # Literal PyTorch broadcast: trailing dims (H, W) align with (N, L).
    lat_mean = jnp.broadcast_to(lat_mean2d, (H, W)).reshape(1, HW)
    lat_std = jnp.broadcast_to(lat_std2d, (H, W)).reshape(1, HW)

    x2d = x.reshape(NC, HW)                              # lane-dense, free reshape
    rows = _pick_row_block(NC, HW)
    grid = (pl.cdiv(NC, rows),)

    out2d = pl.pallas_call(
        _adain_kernel,
        out_shape=jax.ShapeDtypeStruct((NC, HW), jnp.float32),
        grid=grid,
        in_specs=[
            pl.BlockSpec((rows, HW), lambda i: (i, 0)),
            pl.BlockSpec((1, HW), lambda i: (0, 0)),
            pl.BlockSpec((1, HW), lambda i: (0, 0)),
        ],
        out_specs=pl.BlockSpec((rows, HW), lambda i: (i, 0)),
        compiler_params=pltpu.CompilerParams(
            dimension_semantics=("parallel",)),          # v7x: shard rows on 2 TCs
    )(x2d, lat_mean, lat_std)
    return out2d.reshape(N, C, H, W)


def adain_reference(x, latent_style, weight, bias):
    """Pure-JAX reference mirroring the PyTorch forward."""
    mu = jnp.mean(x, axis=(2, 3), keepdims=True)
    var = jnp.var(x, axis=(2, 3), keepdims=True)
    normed = (x - mu) / jnp.sqrt(var + _EPS)
    style = latent_style @ weight.T + bias
    L = latent_style.shape[1]
    mean, std = style[:, :L], style[:, L:]
    return normed * std + mean


if __name__ == "__main__":
    n_channels = 4
    latent_dimension = 16
    # H == N and W == latent_dimension so the module's literal broadcast
    # (out * latent_std with latent_std of shape (N, L)) is valid; H*W = 128
    # makes the per-row layout exactly one full lane width.
    N, C, H, W = 8, n_channels, 8, latent_dimension

    key = jax.random.PRNGKey(0)
    kx, kz, kw, kb = jax.random.split(key, 4)
    x = jax.random.normal(kx, (N, C, H, W), dtype=jnp.float32)
    latent_style = jax.random.normal(kz, (N, latent_dimension), dtype=jnp.float32)

    # nn.Linear(latent_dimension, 2*latent_dimension) params, deterministic
    # uniform init (torch-like bound), then bias[n_channels:] = 1 as in __init__.
    bound = 1.0 / (latent_dimension ** 0.5)
    weight = jax.random.uniform(
        kw, (2 * latent_dimension, latent_dimension),
        minval=-bound, maxval=bound, dtype=jnp.float32)
    bias = jax.random.uniform(
        kb, (2 * latent_dimension,),
        minval=-bound, maxval=bound, dtype=jnp.float32)
    bias = bias.at[n_channels:].set(1.0)

    out = adain_forward(x, latent_style, weight, bias)
    out = jax.block_until_ready(out)

    ref = adain_reference(x, latent_style, weight, bias)
    assert out.shape == (N, C, H, W)
    assert jnp.allclose(out, ref, atol=1e-4, rtol=1e-4), "mismatch vs reference"
    print("KERNEL_OK")
</pallas_src>

<mosaic_0001>
module attributes {stable_mosaic.version = 11 : i64} {
  func.func @_adain_kernel(%arg0: i32, %arg1: memref<32x128xf32, #tpu.memory_space<vmem>>, %arg2: memref<1x128xf32, #tpu.memory_space<vmem>>, %arg3: memref<1x128xf32, #tpu.memory_space<vmem>>, %arg4: memref<32x128xf32, #tpu.memory_space<vmem>>) attributes {dimension_semantics = [#tpu.dimension_semantics<parallel>], iteration_bounds = array<i64: 1>, scalar_prefetch = 0 : i64, scratch_operands = 0 : i64, tpu.core_type = #tpu.core_type<tc>, window_params = [{transform_indices = @transform_0, window_bounds = array<i64: 32, 128>}, {pipeline_mode = #tpu.pipeline_mode<synchronous>, transform_indices = @transform_1, window_bounds = array<i64: 1, 128>}, {pipeline_mode = #tpu.pipeline_mode<synchronous>, transform_indices = @transform_2, window_bounds = array<i64: 1, 128>}, {transform_indices = @transform_3, window_bounds = array<i64: 32, 128>}]} {
    %c0 = arith.constant 0 : index
    %c0_0 = arith.constant 0 : index
    %0 = vector.load %arg1[%c0, %c0_0] : memref<32x128xf32, #tpu.memory_space<vmem>>, vector<32x128xf32>
    %cst = arith.constant dense<0.000000e+00> : vector<32xf32>
    %1 = vector.multi_reduction <add>, %0, %cst [1] : vector<32x128xf32> to vector<32xf32>
    %2 = vector.shape_cast %1 : vector<32xf32> to vector<32x1xf32>
    %3 = arith.mulf %0, %0 : vector<32x128xf32>
    %cst_1 = arith.constant dense<0.000000e+00> : vector<32xf32>
    %4 = vector.multi_reduction <add>, %3, %cst_1 [1] : vector<32x128xf32> to vector<32xf32>
    %5 = vector.shape_cast %4 : vector<32xf32> to vector<32x1xf32>
    %cst_2 = arith.constant 7.812500e-03 : f32
    %6 = vector.broadcast %cst_2 : f32 to vector<32x1xf32>
    %7 = arith.mulf %2, %6 : vector<32x1xf32>
    %cst_3 = arith.constant 7.812500e-03 : f32
    %8 = vector.broadcast %cst_3 : f32 to vector<32x1xf32>
    %9 = arith.mulf %5, %8 : vector<32x1xf32>
    %10 = arith.mulf %7, %7 : vector<32x1xf32>
    %11 = arith.subf %9, %10 : vector<32x1xf32>
    %12 = vector.broadcast %7 : vector<32x1xf32> to vector<32x128xf32>
    %13 = arith.subf %0, %12 : vector<32x128xf32>
    %cst_4 = arith.constant 9.99999974E-6 : f32
    %14 = vector.broadcast %cst_4 : f32 to vector<32x1xf32>
    %15 = arith.addf %11, %14 : vector<32x1xf32>
    %16 = math.rsqrt %15 : vector<32x1xf32>
    %17 = vector.broadcast %16 : vector<32x1xf32> to vector<32x128xf32>
    %18 = arith.mulf %13, %17 : vector<32x128xf32>
    %c0_5 = arith.constant 0 : index
    %c0_6 = arith.constant 0 : index
    %19 = vector.load %arg3[%c0_5, %c0_6] : memref<1x128xf32, #tpu.memory_space<vmem>>, vector<1x128xf32>
    %20 = vector.broadcast %19 : vector<1x128xf32> to vector<32x128xf32>
    %21 = arith.mulf %18, %20 : vector<32x128xf32>
    %c0_7 = arith.constant 0 : index
    %c0_8 = arith.constant 0 : index
    %22 = vector.load %arg2[%c0_7, %c0_8] : memref<1x128xf32, #tpu.memory_space<vmem>>, vector<1x128xf32>
    %23 = vector.broadcast %22 : vector<1x128xf32> to vector<32x128xf32>
    %24 = arith.addf %21, %23 : vector<32x128xf32>
    %c0_9 = arith.constant 0 : index
    %c0_10 = arith.constant 0 : index
    %25 = vector.load %arg4[%c0_9, %c0_10] : memref<32x128xf32, #tpu.memory_space<vmem>>, vector<32x128xf32>
    tpu.vector_store %arg4[%c0_9, %c0_10], %24 {strides = array<i32>} : memref<32x128xf32, #tpu.memory_space<vmem>>, vector<32x128xf32>,
    return
  }
  func.func @transform_0(%arg0: i32) -> (i32, i32) {
    %c0_i32 = arith.constant 0 : i32
    %c0_i32_0 = arith.constant 0 : i32
    return %arg0, %c0_i32 : i32, i32
  }
  func.func @transform_1(%arg0: i32) -> (i32, i32) {
    %c0_i32 = arith.constant 0 : i32
    %c0_i32_0 = arith.constant 0 : i32
    %c0_i32_1 = arith.constant 0 : i32
    return %c0_i32, %c0_i32_0 : i32, i32
  }
  func.func @transform_2(%arg0: i32) -> (i32, i32) {
    %c0_i32 = arith.constant 0 : i32
    %c0_i32_0 = arith.constant 0 : i32
    %c0_i32_1 = arith.constant 0 : i32
    return %c0_i32, %c0_i32_0 : i32, i32
  }
  func.func @transform_3(%arg0: i32) -> (i32, i32) {
    %c0_i32 = arith.constant 0 : i32
    %c0_i32_0 = arith.constant 0 : i32
    return %arg0, %c0_i32 : i32, i32
  }
}

</mosaic_0001>

<bundles_post_ra>
// kernel: tpu_custom_call.1
= control target key start
LH: loop header
LB: loop body
LE: loop exit
PB: predicated region body
PF: predicated region fallthrough
CT: control target
= control target key end

     0   :  { %8 = vsyncpa [#allocation3], 0  ;;  %s347_s0 = inlined_call_operand.hbm [shape: f32[32,128], index: 0, kind: input, shape index: {}]   ;;  %s348_s1 = inlined_call_operand.hbm [shape: f32[1,128], index: 1, kind: input, shape index: {}]   ;;  %s349_s2 = inlined_call_operand.vmem [shape: f32[1,128], index: 2, kind: input, shape index: {}]   ;;  %s350_s3 = inlined_call_operand.hbm [shape: f32[32,128], index: 3, kind: output, shape index: {}]  }
   0x1   :  { %9 = vsyncpa [#allocation6], 0 }
   0x2   :  { %10 = vsyncpa [#allocation4], 0  ;;  %s15_s14 = sshll.u32 %s347_s0, 4  ;;  %s270_s15 = smov [#allocation2]   ;;  %s16_s14 = int_to_ptr.hbm [resolvable:$true] %s15_s14 }
   0x3   :  { %s17_s16 = sshll.u32 %s270_s15, 4  ;;  %s29_s19 = sshll.u32 %s348_s1, 4  ;;  %s18_s16 = int_to_ptr.vmem [resolvable:$true] %s17_s16  ;;  %s30_s19 = int_to_ptr.hbm [resolvable:$true] %s29_s19 }
   0x4   :  { %s271_s20 = smov 128   ;;  %s272_s21 = smov 8  }
   0x5   :  { %23 = dma.hbm_to_vmem [thread:$0]  %s16_s14, 512, %s18_s16, [#allocation3], %s271_s20, %s271_s20, %s272_s21  }
   0x6   :  { %s273_s22 = smov [#allocation5]  }
   0x7   :  { %s31_s23 = sshll.u32 %s273_s22, 4  ;;  %s32_s23 = int_to_ptr.vmem [resolvable:$true] %s31_s23 }
   0x8   :  { %34 = dma.hbm_to_vmem [thread:$0]  %s30_s19, 16, %s32_s23, [#allocation6]  }
   0x9   :  { %264 = dma.done.wait [#allocation3], 512  }
   0xa   :  { %265 = vsyncadd [#allocation3], 4294966784 }
   0xb   :  { %266 = dma.done.wait [#allocation6], 16  }
   0xc   :  { %267 = vsyncadd [#allocation6], 4294967280  ;;  %v304_v0 = vld [vmem:[#allocation2 + $0x10] sm:$0xff]  ;;  %v306_v1 = vld [vmem:[#allocation2] sm:$0xff]  ;;  %s163_s27 = sshll.u32 %s350_s3, 4  ;;  %s164_s27 = int_to_ptr.hbm [resolvable:$true] %s163_s27 }
   0xd   :  { %53 = vadd.xlane.f32.xlu1 %v304_v0  ;;  %49 = vadd.xlane.f32.xlu0 %v306_v1  ;;  %v57_v2 = vmul.f32 %v306_v1, %v306_v1  ;;  %v312_v3 = vld [vmem:[#allocation2 + $0x8] sm:$0xff]  ;;  %v314_v4 = vld [vmem:[#allocation2 + $0x18] sm:$0xff]  ;;  %v59_v7 = vmul.f32 %v304_v0, %v304_v0  ;;  %v182_v45 = vld [vmem:[%s349_s2] ss:$0 sm:$0xff]  ;;  %s274_s2 = smov [#allocation7]  }
   0xe   :  { %v58_v5 = vmul.f32 %v312_v3, %v312_v3  ;;  %v60_v6 = vmul.f32 %v314_v4, %v314_v4  ;;  %v183_v49 = vld [vmem:[#allocation5] ss:$0 sm:$0xff]  ;;  %s161_s24 = sshll.u32 %s274_s2, 4  ;;  %s162_s24 = int_to_ptr.vmem [resolvable:$true] %s161_s24 }
   0xf   :  { %61 = vadd.xlane.f32.xlu2 %v57_v2 }
  0x15   :  { %55 = vadd.xlane.f32.xlu1 %v314_v4  ;;  %51 = vadd.xlane.f32.xlu0 %v312_v3 }
  0x17   :  { %63 = vadd.xlane.f32.xlu2 %v58_v5 }
  0x1d   :  { %67 = vadd.xlane.f32.xlu1 %v60_v6  ;;  %65 = vadd.xlane.f32.xlu0 %v59_v7 }
  0x80   :  { %v54_v8 = vpop.xlane.xlu1 %53  ;;  %v50_v9 = vpop.xlane.xlu0 %49 }
  0x81   :  { %v69_v10 = vmul.f32 0.0078125, %v50_v9  ;;  %v324_v21 = vmul.f32 0.0078125, %v54_v8 }
  0x82   :  { %v62_v11 = vpop.xlane.xlu2 %61 }
  0x83   :  { %v77_v12 = vmul.f32 %v69_v10, %v69_v10  ;;  %v73_v13 = vmul.f32 0.0078125, %v62_v11  ;;  %v79_v26 = vmul.f32 %v324_v21, %v324_v21  ;;  %v85_v44 = vsub.f32 %v306_v1, %v69_v10 }
  0x85   :  { %v81_v14 = vsub.f32 %v73_v13, %v77_v12 }
  0x87   :  { %v89_v15 = vadd.f32 1e-05, %v81_v14 }
  0x88   :  { %v56_v16 = vpop.xlane.xlu1 %55  ;;  %v52_v17 = vpop.xlane.xlu0 %51 }
  0x89   :  { %v70_v18 = vmul.f32 0.0078125, %v52_v17  ;;  %184 = vrsqrt.f32 %v89_v15  ;;  %v326_v23 = vmul.f32 0.0078125, %v56_v16  ;;  %vm99_vm1 = vweird.f32 %v89_v15 }
  0x8a   :  { %v64_v19 = vpop.xlane.xlu2 %63 }
  0x8b   :  { %v78_v20 = vmul.f32 %v70_v18, %v70_v18  ;;  %v74_v22 = vmul.f32 0.0078125, %v64_v19  ;;  %v80_v31 = vmul.f32 %v326_v23, %v326_v23  ;;  %v86_v61 = vsub.f32 %v312_v3, %v70_v18 }
  0x8c   :  { %v88_v9 = vsub.f32 %v314_v4, %v326_v23  ;;  %v87_v3 = vsub.f32 %v304_v0, %v324_v21 }
  0x8d   :  { %v82_v24 = vsub.f32 %v74_v22, %v78_v20 }
  0x8f   :  { %v185_v25 = vpop.eup %184  ;;  %v90_v27 = vadd.f32 1e-05, %v82_v24 }
  0x90   :  { %v68_v28 = vpop.xlane.xlu1 %67  ;;  %v66_v29 = vpop.xlane.xlu0 %65  ;;  %v94_v30 = vmul.f32 %v185_v25, %v89_v15  ;;  %vm100_vm0 = vweird.f32 %v185_v25 }
  0x91   :  { %v76_v32 = vmul.f32 0.0078125, %v68_v28  ;;  %v75_v33 = vmul.f32 0.0078125, %v66_v29  ;;  %186 = vrsqrt.f32 %v90_v27  ;;  %vm101_vm2 = vmor %vm99_vm1, %vm100_vm0  ;;  %vm109_vm4 = vweird.f32 %v90_v27 }
  0x92   :  { %v95_v34 = vmul.f32 %v185_v25, %v94_v30 }
  0x93   :  { %v84_v35 = vsub.f32 %v76_v32, %v80_v31  ;;  %v83_v36 = vsub.f32 %v75_v33, %v79_v26 }
  0x94   :  { %v96_v37 = vmul.f32 0.5, %v95_v34 }
  0x95   :  { %v92_v38 = vadd.f32 1e-05, %v84_v35  ;;  %v91_v39 = vadd.f32 1e-05, %v83_v36 }
  0x96   :  { %v97_v40 = vsub.f32 1.5, %v96_v37 }
  0x97   :  { %188 = vrsqrt.f32 %v92_v38  ;;  %v187_v41 = vpop.eup %186  ;;  %vm129_vm8 = vweird.f32 %v92_v38  ;;  %vm119_vm10 = vweird.f32 %v91_v39 }
  0x98   :  { %190 = vrsqrt.f32 %v91_v39  ;;  %v98_v42 = vmul.f32 %v185_v25, %v97_v40  ;;  %v104_v43 = vmul.f32 %v187_v41, %v90_v27  ;;  %vm110_vm3 = vweird.f32 %v187_v41 }
  0x99   :  { %vm111_vm5 = vmor %vm109_vm4, %vm110_vm3 }
  0x9a   :  { %v102_v46 = vsel %vm101_vm2, %v185_v25, %v98_v42  ;;  %v105_v47 = vmul.f32 %v187_v41, %v104_v43 }
  0x9b   :  { %v133_v48 = vmul.f32 %v102_v46, %v85_v44 }
  0x9c   :  { %v106_v51 = vmul.f32 0.5, %v105_v47 }
  0x9d   :  { %v189_v50 = vpop.eup %188  ;;  %v141_v53 = vmul.f32 %v182_v45, %v133_v48 }
  0x9e   :  { %v191_v52 = vpop.eup %190  ;;  %v124_v54 = vmul.f32 %v189_v50, %v92_v38  ;;  %v107_v55 = vsub.f32 1.5, %v106_v51  ;;  %vm130_vm6 = vweird.f32 %v189_v50 }
  0x9f   :  { %v114_v56 = vmul.f32 %v191_v52, %v91_v39  ;;  %v149_v58 = vadd.f32 %v183_v49, %v141_v53  ;;  %vm120_vm7 = vweird.f32 %v191_v52  ;;  %vm131_vm9 = vmor %vm129_vm8, %vm130_vm6 }
  0xa0   :  { %v125_v57 = vmul.f32 %v189_v50, %v124_v54  ;;  %v108_v59 = vmul.f32 %v187_v41, %v107_v55  ;;  %vm121_vm11 = vmor %vm119_vm10, %vm120_vm7 }
  0xa1   :  { %v115_v60 = vmul.f32 %v191_v52, %v114_v56  ;;  %153 = vst [vmem:[#allocation7] sm:$0xff] %v149_v58 }
  0xa2   :  { %v126_v62 = vmul.f32 0.5, %v125_v57  ;;  %v112_v63 = vsel %vm111_vm5, %v187_v41, %v108_v59 }
  0xa3   :  { %v116_v1 = vmul.f32 0.5, %v115_v60  ;;  %v134_v2 = vmul.f32 %v112_v63, %v86_v61 }
  0xa4   :  { %v127_v5 = vsub.f32 1.5, %v126_v62 }
  0xa5   :  { %v117_v6 = vsub.f32 1.5, %v116_v1  ;;  %v142_v7 = vmul.f32 %v182_v45, %v134_v2 }
  0xa6   :  { %v128_v8 = vmul.f32 %v189_v50, %v127_v5 }
  0xa7   :  { %v118_v10 = vmul.f32 %v191_v52, %v117_v6  ;;  %v150_v12 = vadd.f32 %v183_v49, %v142_v7 }
  0xa8   :  { %v132_v11 = vsel %vm131_vm9, %v189_v50, %v128_v8 }
  0xa9   :  { %v136_v13 = vmul.f32 %v132_v11, %v88_v9  ;;  %v122_v14 = vsel %vm121_vm11, %v191_v52, %v118_v10  ;;  %154 = vst [vmem:[#allocation7 + $0x8] sm:$0xff] %v150_v12 }
  0xaa   :  { %v135_v15 = vmul.f32 %v122_v14, %v87_v3 }
  0xab   :  { %v144_v16 = vmul.f32 %v182_v45, %v136_v13 }
  0xac   :  { %v143_v4 = vmul.f32 %v182_v45, %v135_v15 }
  0xad   :  { %v152_v17 = vadd.f32 %v183_v49, %v144_v16 }
  0xae   :  { %v151_v18 = vadd.f32 %v183_v49, %v143_v4 }
  0xaf   :  { %156 = vst [vmem:[#allocation7 + $0x18] sm:$0xff] %v152_v17 }
  0xb0   :  { %155 = vst [vmem:[#allocation7 + $0x10] sm:$0xff] %v151_v18 }
  0xb1   :  { %169 = dma.vmem_to_hbm [thread:$0]  %s162_s24, 512, %s164_s27, [#allocation4], %s271_s20, %s271_s20, %s272_s21  }
  0xb2   :  { %268 = dma.done.wait [#allocation4], 512  }
  0xb3   :  { %269 = vsyncadd [#allocation4], 4294966784 }
  0xb4   :  { %174 = vsyncpa [#allocation3], 1 }
  0xb5   :  { %175 = vsyncpa [#allocation6], 1 }
  0xb6   :  { %176 = vsyncpa [#allocation4], 1 }

</bundles_post_ra>
